<compile_context>
chip_gen: v7x
topology: tpu7x:2x2x1
jax: 0.10.0
libtpu: 0.0.40
codegen_flags: <defaults>
</compile_context>

<pallas_src>
import jax
import jax.numpy as jnp
from jax.experimental import pallas as pl
from jax.experimental.pallas import tpu as pltpu


def _slo_kernel(theta_ref, x_ref, pa_ref, a0_ref, bias_ref, out_ref, acc_ref):
    k = pl.program_id(2)

    @pl.when(k == 0)
    def _():
        acc_ref[...] = jnp.zeros_like(acc_ref)

    # Weight tile: A_0[o, i] + sum_j theta[j] * P_A[j, o, i]
    # d is small and static -> unrolled scalar*vector FMAs on the VPU.
    d = pa_ref.shape[0]
    w = a0_ref[...]
    for j in range(d):
        w = w + theta_ref[j] * pa_ref[j]

    # Partial product: x[b, i] @ w[o, i].T (contract in_features) on the MXU.
    acc_ref[...] += jax.lax.dot_general(
        x_ref[...], w,
        dimension_numbers=(((1,), (1,)), ((), ())),
        preferred_element_type=jnp.float32,
    )

    @pl.when(k == pl.num_programs(2) - 1)
    def _():
        out_ref[...] = (acc_ref[...] + bias_ref[...]).astype(out_ref.dtype)


def _round_up(n, m):
    return ((n + m - 1) // m) * m


def _pad_axis(a, axis, target):
    pad = target - a.shape[axis]
    if pad == 0:
        return a
    widths = [(0, 0)] * a.ndim
    widths[axis] = (0, pad)
    return jnp.pad(a, widths)


def stochastic_linear_offset(x, theta, P_A, A_0, P_b=None, b_0=None,
                             *, tile_b=512, tile_out=256, tile_in=512):
    """x: [B, in], theta: [d], P_A: [out, in, d], A_0: [out, in],
    P_b: [out, d] | None, b_0: [out] | None  ->  [B, out]."""
    B, in_features = x.shape
    out_features = A_0.shape[0]
    d = theta.shape[0]

    theta = theta.astype(jnp.float32)

    # Hoisted bias(theta): O(out*d), keep it out of the hot loop.
    if P_b is not None:
        bias = P_b.astype(jnp.float32) @ theta + b_0.astype(jnp.float32)
    else:
        bias = jnp.zeros((out_features,), jnp.float32)

    # [out, in, d] -> [d, out, in]: lane axis = in_features (dense, aligned).
    pa = jnp.transpose(P_A, (2, 0, 1))

    # Tile sizes (multiples of 8 / 128); pad every dim to an exact tile multiple.
    tb = min(tile_b, _round_up(B, 8))
    to = min(tile_out, _round_up(out_features, 128))
    tk = min(tile_in, _round_up(in_features, 128))
    Bp = _round_up(B, tb)
    outp = _round_up(out_features, to)
    inp = _round_up(in_features, tk)

    x_p = _pad_axis(_pad_axis(x, 0, Bp), 1, inp)
    pa_p = _pad_axis(_pad_axis(pa, 1, outp), 2, inp)
    a0_p = _pad_axis(_pad_axis(A_0, 0, outp), 1, inp)
    bias_p = _pad_axis(bias, 0, outp).reshape(1, outp)

    grid = (Bp // tb, outp // to, inp // tk)

    out_padded = pl.pallas_call(
        _slo_kernel,
        out_shape=jax.ShapeDtypeStruct((Bp, outp), x.dtype),
        grid_spec=pltpu.PrefetchScalarGridSpec(
            num_scalar_prefetch=0,
            grid=grid,
            in_specs=[
                pl.BlockSpec(memory_space=pltpu.MemorySpace.SMEM),     # theta [d]
                pl.BlockSpec((tb, tk), lambda b, o, k: (b, k)),        # x
                pl.BlockSpec((d, to, tk), lambda b, o, k: (0, o, k)),  # P_A [d,out,in]
                pl.BlockSpec((to, tk), lambda b, o, k: (o, k)),        # A_0
                pl.BlockSpec((1, to), lambda b, o, k: (0, o)),         # bias
            ],
            out_specs=pl.BlockSpec((tb, to), lambda b, o, k: (b, o)),
            scratch_shapes=[pltpu.VMEM((tb, to), jnp.float32)],
        ),
        compiler_params=pltpu.CompilerParams(
            dimension_semantics=("parallel", "parallel", "arbitrary"),
            vmem_limit_bytes=32 * 1024 * 1024,
        ),
    )(theta, x_p, pa_p, a0_p, bias_p)

    return out_padded[:B, :out_features]


if __name__ == "__main__":
    def dense_offset(key, d, shape):
        # F.normalize(torch.randn(shape + [d]), dim=-1) equivalent.
        r = jax.random.normal(key, tuple(shape) + (d,), dtype=jnp.float32)
        n = jnp.linalg.norm(r, axis=-1, keepdims=True)
        return r / jnp.maximum(n, 1e-12)

    def run_case(d, in_features, out_features, batch):
        key = jax.random.PRNGKey(0)
        k_pa, k_a0, k_pb, k_theta, k_x = jax.random.split(key, 5)

        # Buffers matching the module's __init__ / _reset_parameters.
        P_A = dense_offset(k_pa, d, [out_features, in_features])      # [out, in, d]
        A_0 = jax.random.normal(k_a0, (out_features, in_features),
                                dtype=jnp.float32) * jnp.sqrt(2.0 / in_features)
        P_b = dense_offset(k_pb, d, [out_features])                    # [out, d]
        b_0 = jnp.zeros((out_features,), dtype=jnp.float32)

        theta = jax.random.normal(k_theta, (d,), dtype=jnp.float32)
        x = jax.random.normal(k_x, (batch, in_features), dtype=jnp.float32)

        out = stochastic_linear_offset(x, theta, P_A, A_0, P_b, b_0)
        out = jax.block_until_ready(out)

        # Pure-JAX reference.
        hp = jax.lax.Precision.HIGHEST
        w_ref = jnp.einsum("oid,d->oi", P_A, theta, precision=hp) + A_0
        b_ref = P_b @ theta + b_0
        y_ref = jnp.matmul(x, w_ref.T, precision=hp) + b_ref[None, :]

        assert out.shape == (batch, out_features)
        assert jnp.allclose(out, y_ref, rtol=1e-3, atol=1e-3), \
            float(jnp.max(jnp.abs(out - y_ref)))

    # Small, module-consistent shapes (non-aligned dims exercise padding path).
    run_case(d=8, in_features=96, out_features=80, batch=12)
    # Multi-tile grid: 2 out-tiles x 2 in-feature reduction steps.
    run_case(d=8, in_features=1024, out_features=384, batch=40)

    print("KERNEL_OK")
</pallas_src>

<mosaic_0001>
module attributes {stable_mosaic.version = 11 : i64} {
  func.func @_slo_kernel(%arg0: i32, %arg1: i32, %arg2: i32, %arg3: memref<8xf32, #tpu.memory_space<smem>>, %arg4: memref<16x128xf32, #tpu.memory_space<vmem>>, %arg5: memref<8x128x128xf32, #tpu.memory_space<vmem>>, %arg6: memref<128x128xf32, #tpu.memory_space<vmem>>, %arg7: memref<1x128xf32, #tpu.memory_space<vmem>>, %arg8: memref<16x128xf32, #tpu.memory_space<vmem>>, %arg9: memref<16x128xf32, #tpu.memory_space<vmem>>) attributes {dimension_semantics = [#tpu.dimension_semantics<parallel>, #tpu.dimension_semantics<parallel>, #tpu.dimension_semantics<arbitrary>], iteration_bounds = array<i64: 1, 1, 1>, scalar_prefetch = 0 : i64, scratch_operands = 1 : i64, tpu.core_type = #tpu.core_type<tc>, window_params = [{transform_indices = @transform_0, window_bounds = array<i64: 8>}, {transform_indices = @transform_1, window_bounds = array<i64: 16, 128>}, {transform_indices = @transform_2, window_bounds = array<i64: 8, 128, 128>}, {transform_indices = @transform_3, window_bounds = array<i64: 128, 128>}, {transform_indices = @transform_4, window_bounds = array<i64: 1, 128>}, {transform_indices = @transform_5, window_bounds = array<i64: 16, 128>}]} {
    %c0_i32 = arith.constant 0 : i32
    %0 = arith.cmpi eq, %arg2, %c0_i32 : i32
    %1 = arith.extui %0 : i1 to i32
    %c0_i32_0 = arith.constant 0 : i32
    %2 = arith.cmpi ne, %1, %c0_i32_0 : i32
    scf.if %2 {
      %cst_35 = arith.constant 0.000000e+00 : f32
      %60 = vector.broadcast %cst_35 : f32 to vector<16x128xf32>
      %c0_36 = arith.constant 0 : index
      %c0_37 = arith.constant 0 : index
      %61 = vector.load %arg9[%c0_36, %c0_37] : memref<16x128xf32, #tpu.memory_space<vmem>>, vector<16x128xf32>
      tpu.vector_store %arg9[%c0_36, %c0_37], %60 {strides = array<i32>} : memref<16x128xf32, #tpu.memory_space<vmem>>, vector<16x128xf32>,
    } else {
    }
    %c0 = arith.constant 0 : index
    %c0_1 = arith.constant 0 : index
    %3 = vector.load %arg6[%c0, %c0_1] : memref<128x128xf32, #tpu.memory_space<vmem>>, vector<128x128xf32>
    %c0_2 = arith.constant 0 : index
    %4 = memref.load %arg3[%c0_2] : memref<8xf32, #tpu.memory_space<smem>>
    %c0_3 = arith.constant 0 : index
    %c0_4 = arith.constant 0 : index
    %c0_5 = arith.constant 0 : index
    %5 = vector.load %arg5[%c0_3, %c0_4, %c0_5] : memref<8x128x128xf32, #tpu.memory_space<vmem>>, vector<1x128x128xf32>
    %6 = vector.shape_cast %5 : vector<1x128x128xf32> to vector<128x128xf32>
    %7 = vector.broadcast %4 : f32 to vector<128x128xf32>
    %8 = arith.mulf %7, %6 : vector<128x128xf32>
    %9 = arith.addf %3, %8 : vector<128x128xf32>
    %c1 = arith.constant 1 : index
    %10 = memref.load %arg3[%c1] : memref<8xf32, #tpu.memory_space<smem>>
    %c1_6 = arith.constant 1 : index
    %c0_7 = arith.constant 0 : index
    %c0_8 = arith.constant 0 : index
    %11 = vector.load %arg5[%c1_6, %c0_7, %c0_8] : memref<8x128x128xf32, #tpu.memory_space<vmem>>, vector<1x128x128xf32>
    %12 = vector.shape_cast %11 : vector<1x128x128xf32> to vector<128x128xf32>
    %13 = vector.broadcast %10 : f32 to vector<128x128xf32>
    %14 = arith.mulf %13, %12 : vector<128x128xf32>
    %15 = arith.addf %9, %14 : vector<128x128xf32>
    %c2 = arith.constant 2 : index
    %16 = memref.load %arg3[%c2] : memref<8xf32, #tpu.memory_space<smem>>
    %c2_9 = arith.constant 2 : index
    %c0_10 = arith.constant 0 : index
    %c0_11 = arith.constant 0 : index
    %17 = vector.load %arg5[%c2_9, %c0_10, %c0_11] : memref<8x128x128xf32, #tpu.memory_space<vmem>>, vector<1x128x128xf32>
    %18 = vector.shape_cast %17 : vector<1x128x128xf32> to vector<128x128xf32>
    %19 = vector.broadcast %16 : f32 to vector<128x128xf32>
    %20 = arith.mulf %19, %18 : vector<128x128xf32>
    %21 = arith.addf %15, %20 : vector<128x128xf32>
    %c3 = arith.constant 3 : index
    %22 = memref.load %arg3[%c3] : memref<8xf32, #tpu.memory_space<smem>>
    %c3_12 = arith.constant 3 : index
    %c0_13 = arith.constant 0 : index
    %c0_14 = arith.constant 0 : index
    %23 = vector.load %arg5[%c3_12, %c0_13, %c0_14] : memref<8x128x128xf32, #tpu.memory_space<vmem>>, vector<1x128x128xf32>
    %24 = vector.shape_cast %23 : vector<1x128x128xf32> to vector<128x128xf32>
    %25 = vector.broadcast %22 : f32 to vector<128x128xf32>
    %26 = arith.mulf %25, %24 : vector<128x128xf32>
    %27 = arith.addf %21, %26 : vector<128x128xf32>
    %c4 = arith.constant 4 : index
    %28 = memref.load %arg3[%c4] : memref<8xf32, #tpu.memory_space<smem>>
    %c4_15 = arith.constant 4 : index
    %c0_16 = arith.constant 0 : index
    %c0_17 = arith.constant 0 : index
    %29 = vector.load %arg5[%c4_15, %c0_16, %c0_17] : memref<8x128x128xf32, #tpu.memory_space<vmem>>, vector<1x128x128xf32>
    %30 = vector.shape_cast %29 : vector<1x128x128xf32> to vector<128x128xf32>
    %31 = vector.broadcast %28 : f32 to vector<128x128xf32>
    %32 = arith.mulf %31, %30 : vector<128x128xf32>
    %33 = arith.addf %27, %32 : vector<128x128xf32>
    %c5 = arith.constant 5 : index
    %34 = memref.load %arg3[%c5] : memref<8xf32, #tpu.memory_space<smem>>
    %c5_18 = arith.constant 5 : index
    %c0_19 = arith.constant 0 : index
    %c0_20 = arith.constant 0 : index
    %35 = vector.load %arg5[%c5_18, %c0_19, %c0_20] : memref<8x128x128xf32, #tpu.memory_space<vmem>>, vector<1x128x128xf32>
    %36 = vector.shape_cast %35 : vector<1x128x128xf32> to vector<128x128xf32>
    %37 = vector.broadcast %34 : f32 to vector<128x128xf32>
    %38 = arith.mulf %37, %36 : vector<128x128xf32>
    %39 = arith.addf %33, %38 : vector<128x128xf32>
    %c6 = arith.constant 6 : index
    %40 = memref.load %arg3[%c6] : memref<8xf32, #tpu.memory_space<smem>>
    %c6_21 = arith.constant 6 : index
    %c0_22 = arith.constant 0 : index
    %c0_23 = arith.constant 0 : index
    %41 = vector.load %arg5[%c6_21, %c0_22, %c0_23] : memref<8x128x128xf32, #tpu.memory_space<vmem>>, vector<1x128x128xf32>
    %42 = vector.shape_cast %41 : vector<1x128x128xf32> to vector<128x128xf32>
    %43 = vector.broadcast %40 : f32 to vector<128x128xf32>
    %44 = arith.mulf %43, %42 : vector<128x128xf32>
    %45 = arith.addf %39, %44 : vector<128x128xf32>
    %c7 = arith.constant 7 : index
    %46 = memref.load %arg3[%c7] : memref<8xf32, #tpu.memory_space<smem>>
    %c7_24 = arith.constant 7 : index
    %c0_25 = arith.constant 0 : index
    %c0_26 = arith.constant 0 : index
    %47 = vector.load %arg5[%c7_24, %c0_25, %c0_26] : memref<8x128x128xf32, #tpu.memory_space<vmem>>, vector<1x128x128xf32>
    %48 = vector.shape_cast %47 : vector<1x128x128xf32> to vector<128x128xf32>
    %49 = vector.broadcast %46 : f32 to vector<128x128xf32>
    %50 = arith.mulf %49, %48 : vector<128x128xf32>
    %51 = arith.addf %45, %50 : vector<128x128xf32>
    %c0_27 = arith.constant 0 : index
    %c0_28 = arith.constant 0 : index
    %52 = vector.load %arg9[%c0_27, %c0_28] : memref<16x128xf32, #tpu.memory_space<vmem>>, vector<16x128xf32>
    %c0_29 = arith.constant 0 : index
    %c0_30 = arith.constant 0 : index
    %53 = vector.load %arg4[%c0_29, %c0_30] : memref<16x128xf32, #tpu.memory_space<vmem>>, vector<16x128xf32>
    %cst = arith.constant dense<0.000000e+00> : vector<16x128xf32>
    %54 = tpu.matmul %53, %51, %cst {dimension_numbers = #tpu.dot_dimension_numbers<[1], [1], [0], [0], [0, 0, 1, 0], [], []>} : vector<16x128xf32>, vector<128x128xf32>, vector<16x128xf32> -> vector<16x128xf32>
    %55 = arith.addf %52, %54 : vector<16x128xf32>
    %c0_31 = arith.constant 0 : index
    %c0_32 = arith.constant 0 : index
    %56 = vector.load %arg9[%c0_31, %c0_32] : memref<16x128xf32, #tpu.memory_space<vmem>>, vector<16x128xf32>
    tpu.vector_store %arg9[%c0_31, %c0_32], %55 {strides = array<i32>} : memref<16x128xf32, #tpu.memory_space<vmem>>, vector<16x128xf32>,
    %c0_i32_33 = arith.constant 0 : i32
    %57 = arith.cmpi eq, %arg2, %c0_i32_33 : i32
    %58 = arith.extui %57 : i1 to i32
    %c0_i32_34 = arith.constant 0 : i32
    %59 = arith.cmpi ne, %58, %c0_i32_34 : i32
    scf.if %59 {
      %c0_35 = arith.constant 0 : index
      %c0_36 = arith.constant 0 : index
      %60 = vector.load %arg9[%c0_35, %c0_36] : memref<16x128xf32, #tpu.memory_space<vmem>>, vector<16x128xf32>
      %c0_37 = arith.constant 0 : index
      %c0_38 = arith.constant 0 : index
      %61 = vector.load %arg7[%c0_37, %c0_38] : memref<1x128xf32, #tpu.memory_space<vmem>>, vector<1x128xf32>
      %62 = vector.broadcast %61 : vector<1x128xf32> to vector<16x128xf32>
      %63 = arith.addf %60, %62 : vector<16x128xf32>
      %c0_39 = arith.constant 0 : index
      %c0_40 = arith.constant 0 : index
      %64 = vector.load %arg8[%c0_39, %c0_40] : memref<16x128xf32, #tpu.memory_space<vmem>>, vector<16x128xf32>
      tpu.vector_store %arg8[%c0_39, %c0_40], %63 {strides = array<i32>} : memref<16x128xf32, #tpu.memory_space<vmem>>, vector<16x128xf32>,
    } else {
    }
    return
  }
  func.func @transform_0(%arg0: i32, %arg1: i32, %arg2: i32) -> i32 {
    %c0_i32 = arith.constant 0 : i32
    %c0_i32_0 = arith.constant 0 : i32
    return %c0_i32 : i32
  }
  func.func @transform_1(%arg0: i32, %arg1: i32, %arg2: i32) -> (i32, i32) {
    %c0_i32 = arith.constant 0 : i32
    return %arg0, %arg2 : i32, i32
  }
  func.func @transform_2(%arg0: i32, %arg1: i32, %arg2: i32) -> (i32, i32, i32) {
    %c0_i32 = arith.constant 0 : i32
    %c0_i32_0 = arith.constant 0 : i32
    return %c0_i32, %arg1, %arg2 : i32, i32, i32
  }
  func.func @transform_3(%arg0: i32, %arg1: i32, %arg2: i32) -> (i32, i32) {
    %c0_i32 = arith.constant 0 : i32
    return %arg1, %arg2 : i32, i32
  }
  func.func @transform_4(%arg0: i32, %arg1: i32, %arg2: i32) -> (i32, i32) {
    %c0_i32 = arith.constant 0 : i32
    %c0_i32_0 = arith.constant 0 : i32
    return %c0_i32, %arg1 : i32, i32
  }
  func.func @transform_5(%arg0: i32, %arg1: i32, %arg2: i32) -> (i32, i32) {
    %c0_i32 = arith.constant 0 : i32
    return %arg0, %arg1 : i32, i32
  }
}

</mosaic_0001>

<bundles_post_ra>
// kernel: tpu_custom_call.1
= control target key start
LH: loop header
LB: loop body
LE: loop exit
PB: predicated region body
PF: predicated region fallthrough
CT: control target
= control target key end

     0   :  { %10 = vsyncpa [#allocation6], 0  ;;  %s1091_s0 = inlined_call_operand.hbm [shape: f32[8], index: 0, kind: input, shape index: {}]   ;;  %s1092_s1 = inlined_call_operand.hbm [shape: f32[16,128], index: 1, kind: input, shape index: {}]   ;;  %s1093_s2 = inlined_call_operand.hbm [shape: f32[8,128,128], index: 2, kind: input, shape index: {}]   ;;  %s1094_s3 = inlined_call_operand.hbm [shape: f32[128,128], index: 3, kind: input, shape index: {}]   ;;  %s1095_s4 = inlined_call_operand.vmem [shape: f32[1,128], index: 4, kind: input, shape index: {}]   ;;  %s1096_s5 = inlined_call_operand.hbm [shape: f32[16,128], index: 5, kind: output, shape index: {}]  }
   0x1   :  { %11 = vsyncpa [#allocation4], 0 }
   0x2   :  { %12 = vsyncpa [#allocation9], 0 }
   0x3   :  { %13 = vsyncpa [#allocation5], 0  ;;  %s826_s18 = smov [#allocation8]   ;;  %s827_s20 = smov [#allocation7]  }
   0x4   :  { %s39_s19 = sshll.u32 %s826_s18, 4  ;;  %s27_s21 = sshll.u32 %s827_s20, 4  ;;  %s40_s19 = int_to_ptr.vmem [resolvable:$true] %s39_s19  ;;  %s28_s21 = int_to_ptr.vmem [resolvable:$true] %s27_s21 }
   0x5   :  { %s720_s24 = scalar_lea.hbm %s1093_s2, 16384 }
   0x6   :  { %p721_p0 = scmp.ne.s32.totalorder %s1093_s2, %s720_s24  ;;  %p724_p1 = scmp.lt.u32.totalorder %s720_s24, %s1093_s2 }
   0x8   :  { %p726_p2 = pnand %p724_p1, %p721_p0 }
   0xa   :  { %729 = shalt.err (!%p726_p2)
}
   0xb   :  { %s730_s29 = scalar_lea.vmem %s40_s19, 16384  ;;  %p735_p4 = scmp.lt.s32.totalorder %s40_s19, %s40_s19 }
   0xc   :  { %p731_p3 = scmp.ne.s32.totalorder %s40_s19, %s730_s29  ;;  %p736_p5 = scmp.lt.s32.totalorder %s730_s29, %s730_s29 }
   0xe   :  { %p737_p6 = por %p736_p5, %p735_p4 }
  0x10   :  { %p738_p7 = pnand %p737_p6, %p731_p3 }
  0x12   :  { %741 = shalt.err (!%p738_p7)
}
  0x13   :  { %s828_s30 = smov 128   ;;  %s829_s6 = smov 8  }
  0x14   :  { %45 = dma.hbm_to_vmem [thread:$0]  %s1093_s2, 16384, %s40_s19, [#allocation9], %s828_s30, %s828_s30, %s829_s6  }
  0x15   :  { %s742_s11 = scalar_lea.hbm %s1091_s0, 16 }
  0x16   :  { %p743_p8 = scmp.ne.s32.totalorder %s1091_s0, %s742_s11  ;;  %p746_p9 = scmp.lt.u32.totalorder %s742_s11, %s1091_s0 }
  0x18   :  { %p748_p10 = pnand %p746_p9, %p743_p8 }
  0x1a   :  { %751 = shalt.err (!%p748_p10)
}
  0x1b   :  { %s830_s16 = smov [#allocation3]   ;;  %s752_s20 = scalar_lea.hbm %s1092_s1, 256 }
  0x1c   :  { %21 = dma.hbm_to_smem %s1091_s0, 16, %s830_s16, [#allocation6]  }
  0x1d   :  { %p753_p11 = scmp.ne.s32.totalorder %s1092_s1, %s752_s20  ;;  %p756_p12 = scmp.lt.u32.totalorder %s752_s20, %s1092_s1 }
  0x1f   :  { %p758_p13 = pnand %p756_p12, %p753_p11 }
  0x21   :  { %761 = shalt.err (!%p758_p13)
}
  0x22   :  { %s762_s26 = scalar_lea.vmem %s28_s21, 256  ;;  %p767_p1 = scmp.lt.s32.totalorder %s28_s21, %s28_s21 }
  0x23   :  { %p763_p0 = scmp.ne.s32.totalorder %s28_s21, %s762_s26  ;;  %p768_p2 = scmp.lt.s32.totalorder %s762_s26, %s762_s26 }
  0x25   :  { %p769_p3 = por %p768_p2, %p767_p1 }
  0x27   :  { %p770_p4 = pnand %p769_p3, %p763_p0 }
  0x29   :  { %773 = shalt.err (!%p770_p4)
}
  0x2a   :  { %33 = dma.hbm_to_vmem [thread:$0]  %s1092_s1, 256, %s28_s21, [#allocation4], %s828_s30, %s828_s30, %s829_s6  }
  0x2b   :  { %s831_s28 = smov [#allocation10]   ;;  %s774_s9 = scalar_lea.hbm %s1094_s3, 2048 }
  0x2c   :  { %s51_s29 = sshll.u32 %s831_s28, 4  ;;  %p775_p5 = scmp.ne.s32.totalorder %s1094_s3, %s774_s9  ;;  %s52_s29 = int_to_ptr.vmem [resolvable:$true] %s51_s29 }
  0x2d   :  { %p778_p6 = scmp.lt.u32.totalorder %s774_s9, %s1094_s3 }
  0x2f   :  { %p780_p7 = pnand %p778_p6, %p775_p5 }
  0x31   :  { %783 = shalt.err (!%p780_p7)
}
  0x32   :  { %s784_s14 = scalar_lea.vmem %s52_s29, 2048  ;;  %p789_p9 = scmp.lt.s32.totalorder %s52_s29, %s52_s29 }
  0x33   :  { %p785_p8 = scmp.ne.s32.totalorder %s52_s29, %s784_s14  ;;  %p790_p10 = scmp.lt.s32.totalorder %s784_s14, %s784_s14 }
  0x35   :  { %p791_p11 = por %p790_p10, %p789_p9 }
  0x37   :  { %p792_p12 = pnand %p791_p11, %p785_p8 }
  0x39   :  { %795 = shalt.err (!%p792_p12)
}
  0x3a   :  { %57 = dma.hbm_to_vmem [thread:$0]  %s1094_s3, 2048, %s52_s29, [#allocation9], %s828_s30, %s828_s30, %s829_s6  }
  0x3b   :  { %818 = dma.done.wait [#allocation6], 16  }
  0x3c   :  { %819 = vsyncadd [#allocation6], 4294967280 }
  0x3d   :  { %820 = dma.done.wait [#allocation4], 256  }
  0x3e   :  { %821 = vsyncadd [#allocation4], 4294967040 }
  0x3f   :  { %822 = dma.done.wait [#allocation9], 18432  }
  0x40   :  { %823 = vsyncadd [#allocation9], 4294948864 }
  0x41   :  { %72 = sfence }
  0x42   :  { %s95_s15 = sld [smem:[#allocation3]]  ;;  %s620_s16 = sld [smem:[#allocation3 + $0x1]]  ;;  %v79_v0 = vld [vmem:[#allocation10] sm:$0xff]  ;;  %v97_v2 = vld [vmem:[#allocation8 + $0x8] sm:$0xff]  ;;  %v98_v38 = vld [vmem:[#allocation8 + $0x10] sm:$0xff] }
  0x43   :  { %s621_s17 = sld [smem:[#allocation3 + $0x2]]  ;;  %s622_s18 = sld [smem:[#allocation3 + $0x3]]  ;;  %v96_v1 = vld [vmem:[#allocation8] sm:$0xff]  ;;  %v148_v4 = vld [vmem:[#allocation8 + $0x88] sm:$0xff]  ;;  %v99_v39 = vld [vmem:[#allocation8 + $0x18] sm:$0xff] }
  0x44   :  { %s920_s2 = sld [smem:[#allocation3 + $0x4]]  ;;  %s624_s19 = sld [smem:[#allocation3 + $0x5]]  ;;  %v147_v3 = vld [vmem:[#allocation8 + $0x80] sm:$0xff]  ;;  %v80_v5 = vld [vmem:[#allocation10 + $0x8] sm:$0xff]  ;;  %v81_v44 = vld [vmem:[#allocation10 + $0x10] sm:$0xff] }
  0x45   :  { %s922_s3 = sld [smem:[#allocation3 + $0x6]]  ;;  %s924_s20 = sld [smem:[#allocation3 + $0x7]]  ;;  %v198_v7 = vld [vmem:[#allocation8 + $0x100] sm:$0xff]  ;;  %v199_v8 = vld [vmem:[#allocation8 + $0x108] sm:$0xff]  ;;  %v149_v45 = vld [vmem:[#allocation8 + $0x90] sm:$0xff] }
  0x46   :  { %v249_v12 = vld [vmem:[#allocation8 + $0x180] sm:$0xff]  ;;  %v250_v13 = vld [vmem:[#allocation8 + $0x188] sm:$0xff]  ;;  %v150_v46 = vld [vmem:[#allocation8 + $0x98] sm:$0xff]  ;;  %s832_s24 = smov [#allocation11]  }
  0x47   :  { %v300_v18 = vld [vmem:[#allocation8 + $0x200] sm:$0xff]  ;;  %v301_v19 = vld [vmem:[#allocation8 + $0x208] sm:$0xff]  ;;  %v82_v51 = vld [vmem:[#allocation10 + $0x18] sm:$0xff]  ;;  %s606_s25 = sshll.u32 %s832_s24, 4  ;;  %s607_s25 = int_to_ptr.vmem [resolvable:$true] %s606_s25 }
  0x48   :  { %v926_v6 = vstv %s95_s15  ;;  %v930_v11 = vstv %s620_s16  ;;  %v351_v24 = vld [vmem:[#allocation8 + $0x280] sm:$0xff]  ;;  %v352_v25 = vld [vmem:[#allocation8 + $0x288] sm:$0xff]  ;;  %v200_v52 = vld [vmem:[#allocation8 + $0x110] sm:$0xff]  ;;  %s796_s26 = scalar_lea.vmem %s607_s25, 256  ;;  %p801_p0 = scmp.lt.s32.totalorder %s607_s25, %s607_s25 }
  0x49   :  { %v113_v9 = vmul.f32 %v926_v6, %v96_v1  ;;  %v114_v10 = vmul.f32 %v926_v6, %v97_v2  ;;  %v164_v14 = vmul.f32 %v930_v11, %v147_v3  ;;  %v165_v15 = vmul.f32 %v930_v11, %v148_v4  ;;  %v402_v30 = vld [vmem:[#allocation8 + $0x300] sm:$0xff]  ;;  %v403_v31 = vld [vmem:[#allocation8 + $0x308] sm:$0xff]  ;;  %v201_v53 = vld [vmem:[#allocation8 + $0x118] sm:$0xff]  ;;  %p797_p13 = scmp.ne.s32.totalorder %s607_s25, %s796_s26  ;;  %p802_p1 = scmp.lt.s32.totalorder %s796_s26, %s796_s26 }
  0x4a   :  { %v934_v16 = vstv %s621_s17  ;;  %v936_v17 = vstv %s622_s18  ;;  %v943_v28 = vstv %s920_s2  ;;  %v945_v29 = vstv %s624_s19  ;;  %v453_v32 = vld [vmem:[#allocation8 + $0x380] sm:$0xff]  ;;  %v454_v37 = vld [vmem:[#allocation8 + $0x388] sm:$0xff]  ;;  %v251_v58 = vld [vmem:[#allocation8 + $0x190] sm:$0xff] }
  0x4b   :  { %v129_v20 = vadd.f32 %v113_v9, %v79_v0  ;;  %v130_v21 = vadd.f32 %v114_v10, %v80_v5  ;;  %v215_v22 = vmul.f32 %v934_v16, %v198_v7  ;;  %v216_v23 = vmul.f32 %v934_v16, %v199_v8  ;;  %v252_v59 = vld [vmem:[#allocation8 + $0x198] sm:$0xff]  ;;  %v302_v0 = vld [vmem:[#allocation8 + $0x210] sm:$0xff]  ;;  %p803_p2 = por %p802_p1, %p801_p0 }
  0x4c   :  { %v266_v26 = vmul.f32 %v936_v17, %v249_v12  ;;  %v267_v27 = vmul.f32 %v936_v17, %v250_v13  ;;  %v317_v35 = vmul.f32 %v943_v28, %v300_v18  ;;  %v318_v36 = vmul.f32 %v943_v28, %v301_v19  ;;  %v303_v1 = vld [vmem:[#allocation8 + $0x218] sm:$0xff]  ;;  %v353_v7 = vld [vmem:[#allocation8 + $0x290] sm:$0xff] }
  0x4d   :  { %v180_v33 = vadd.f32 %v164_v14, %v129_v20  ;;  %v181_v34 = vadd.f32 %v165_v15, %v130_v21  ;;  %v368_v40 = vmul.f32 %v945_v29, %v351_v24  ;;  %v369_v41 = vmul.f32 %v945_v29, %v352_v25  ;;  %v354_v8 = vld [vmem:[#allocation8 + $0x298] sm:$0xff]  ;;  %v404_v14 = vld [vmem:[#allocation8 + $0x310] sm:$0xff]  ;;  %p804_p3 = pnand %p803_p2, %p797_p13 }
  0x4e   :  { %v952_v42 = vstv %s922_s3  ;;  %v955_v43 = vstv %s924_s20  ;;  %v115_v56 = vmul.f32 %v926_v6, %v98_v38  ;;  %v116_v57 = vmul.f32 %v926_v6, %v99_v39  ;;  %v405_v15 = vld [vmem:[#allocation8 + $0x318] sm:$0xff] }
  0x4f   :  { %v231_v47 = vadd.f32 %v215_v22, %v180_v33  ;;  %v232_v48 = vadd.f32 %v216_v23, %v181_v34  ;;  %v419_v49 = vmul.f32 %v952_v42, %v402_v30  ;;  %v420_v50 = vmul.f32 %v952_v42, %v403_v31  ;;  %v455_v22 = vld [vmem:[#allocation8 + $0x390] sm:$0xff]  ;;  %v456_v23 = vld [vmem:[#allocation8 + $0x398] sm:$0xff]  ;;  %v100_v30 = vld [vmem:[#allocation8 + $0x20] sm:$0xff] }
  0x50   :  { %v470_v54 = vmul.f32 %v955_v43, %v453_v32  ;;  %v471_v55 = vmul.f32 %v955_v43, %v454_v37  ;;  %v166_v62 = vmul.f32 %v930_v11, %v149_v45  ;;  %v167_v63 = vmul.f32 %v930_v11, %v150_v46  ;;  %v101_v31 = vld [vmem:[#allocation8 + $0x28] sm:$0xff] }
  0x51   :  { %v282_v60 = vadd.f32 %v266_v26, %v231_v47  ;;  %v283_v61 = vadd.f32 %v267_v27, %v232_v48  ;;  %v131_v2 = vadd.f32 %v115_v56, %v81_v44  ;;  %v132_v3 = vadd.f32 %v116_v57, %v82_v51  ;;  %v152_v37 = vld [vmem:[#allocation8 + $0xa8] sm:$0xff]  ;;  %v253_v56 = vld [vmem:[#allocation8 + $0x1a0] sm:$0xff] }
  0x52   :  { %v217_v4 = vmul.f32 %v934_v16, %v200_v52  ;;  %v218_v5 = vmul.f32 %v934_v16, %v201_v53  ;;  %v268_v12 = vmul.f32 %v936_v17, %v251_v58  ;;  %v269_v13 = vmul.f32 %v936_v17, %v252_v59  ;;  %v84_v45 = vld [vmem:[#allocation10 + $0x28] sm:$0xff]  ;;  %v202_v52 = vld [vmem:[#allocation8 + $0x120] sm:$0xff] }
  0x53   :  { %v333_v9 = vadd.f32 %v317_v35, %v282_v60  ;;  %v334_v10 = vadd.f32 %v318_v36, %v283_v61  ;;  %v182_v18 = vadd.f32 %v166_v62, %v131_v2  ;;  %v183_v19 = vadd.f32 %v167_v63, %v132_v3  ;;  %v151_v36 = vld [vmem:[#allocation8 + $0xa0] sm:$0xff]  ;;  %v203_v53 = vld [vmem:[#allocation8 + $0x128] sm:$0xff] }
  0x54   :  { %v319_v20 = vmul.f32 %v943_v28, %v302_v0  ;;  %v320_v21 = vmul.f32 %v943_v28, %v303_v1  ;;  %v370_v26 = vmul.f32 %v945_v29, %v353_v7  ;;  %v371_v27 = vmul.f32 %v945_v29, %v354_v8  ;;  %v254_v63 = vld [vmem:[#allocation8 + $0x1a8] sm:$0xff]  ;;  %v304_v0 = vld [vmem:[#allocation8 + $0x220] sm:$0xff] }
  0x55   :  { %v384_v24 = vadd.f32 %v368_v40, %v333_v9  ;;  %v385_v25 = vadd.f32 %v369_v41, %v334_v10  ;;  %v233_v32 = vadd.f32 %v217_v4, %v182_v18  ;;  %v234_v33 = vadd.f32 %v218_v5, %v183_v19  ;;  %v83_v41 = vld [vmem:[#allocation10 + $0x20] sm:$0xff]  ;;  %v305_v1 = vld [vmem:[#allocation8 + $0x228] sm:$0xff] }
  0x56   :  { %v421_v34 = vmul.f32 %v952_v42, %v404_v14  ;;  %v422_v35 = vmul.f32 %v952_v42, %v405_v15  ;;  %v472_v44 = vmul.f32 %v955_v43, %v455_v22  ;;  %v473_v40 = vmul.f32 %v955_v43, %v456_v23  ;;  %v356_v10 = vld [vmem:[#allocation8 + $0x2a8] sm:$0xff]  ;;  %v457_v19 = vld [vmem:[#allocation8 + $0x3a0] sm:$0xff] }
  0x57   :  { %v435_v38 = vadd.f32 %v419_v49, %v384_v24  ;;  %v436_v39 = vadd.f32 %v420_v50, %v385_v25  ;;  %v284_v46 = vadd.f32 %v268_v12, %v233_v32  ;;  %v285_v47 = vadd.f32 %v269_v13, %v234_v33  ;;  %v406_v12 = vld [vmem:[#allocation8 + $0x320] sm:$0xff]  ;;  %v407_v13 = vld [vmem:[#allocation8 + $0x328] sm:$0xff]  ;;  %v102_v24 = vld [vmem:[#allocation8 + $0x30] sm:$0xff] }
  0x58   :  { %v117_v48 = vmul.f32 %v926_v6, %v100_v30  ;;  %v118_v51 = vmul.f32 %v926_v6, %v101_v31  ;;  %v168_v49 = vmul.f32 %v930_v11, %v151_v36  ;;  %v169_v50 = vmul.f32 %v930_v11, %v152_v37  ;;  %v103_v25 = vld [vmem:[#allocation8 + $0x38] sm:$0xff]  ;;  %v85_v33 = vld [vmem:[#allocation10 + $0x30] sm:$0xff] }
  0x59   :  { %v486_v57 = vadd.f32 %v470_v54, %v435_v38  ;;  %v487_v58 = vadd.f32 %v471_v55, %v436_v39  ;;  %v335_v59 = vadd.f32 %v319_v20, %v284_v46  ;;  %v336_v60 = vadd.f32 %v320_v21, %v285_v47  ;;  %v355_v54 = vld [vmem:[#allocation8 + $0x2a0] sm:$0xff]  ;;  %v154_v36 = vld [vmem:[#allocation8 + $0xb8] sm:$0xff]  ;;  %v458_v46 = vld [vmem:[#allocation8 + $0x3a8] sm:$0xff] }
  0x5a   :  { %v133_v61 = vadd.f32 %v117_v48, %v83_v41  ;;  %v134_v62 = vadd.f32 %v118_v51, %v84_v45  ;;  %v219_v3 = vmul.f32 %v934_v16, %v202_v52  ;;  %v220_v4 = vmul.f32 %v934_v16, %v203_v53  ;;  %v204_v41 = vld [vmem:[#allocation8 + $0x130] sm:$0xff]  ;;  %v205_v45 = vld [vmem:[#allocation8 + $0x138] sm:$0xff] }
  0x5b   :  { %v681_v2 = vpack.c.bf16 %v487_v58, %v486_v57  ;;  %v270_v5 = vmul.f32 %v936_v17, %v253_v56  ;;  %v386_v55 = vadd.f32 %v370_v26, %v335_v59  ;;  %v387_v7 = vadd.f32 %v371_v27, %v336_v60  ;;  %v153_v26 = vld [vmem:[#allocation8 + $0xb0] sm:$0xff] }
  0x5c   :  { %v184_v8 = vadd.f32 %v168_v49, %v133_v61  ;;  %v185_v9 = vadd.f32 %v169_v50, %v134_v62  ;;  %v271_v14 = vmul.f32 %v936_v17, %v254_v63  ;;  %v321_v15 = vmul.f32 %v943_v28, %v304_v0  ;;  %v255_v53 = vld [vmem:[#allocation8 + $0x1b0] sm:$0xff]  ;;  %v307_v62 = vld [vmem:[#allocation8 + $0x238] sm:$0xff] }
  0x5d   :  { %682 = vmatprep.subr.bf16.mxu0 %v681_v2  ;;  %v322_v18 = vmul.f32 %v943_v28, %v305_v1  ;;  %v437_v20 = vadd.f32 %v421_v34, %v386_v55  ;;  %v438_v21 = vadd.f32 %v422_v35, %v387_v7  ;;  %v372_v27 = vmul.f32 %v945_v29, %v355_v54  ;;  %v86_v35 = vld [vmem:[#allocation10 + $0x38] sm:$0xff]  ;;  %v306_v49 = vld [vmem:[#allocation8 + $0x230] sm:$0xff] }
  0x5e   :  { %684 = vmatpush3.bf16.xpose.msra.mxu0 %v681_v2  ;;  %v235_v22 = vadd.f32 %v219_v3, %v184_v8  ;;  %v236_v23 = vadd.f32 %v220_v4, %v185_v9  ;;  %v373_v30 = vmul.f32 %v945_v29, %v356_v10  ;;  %v423_v31 = vmul.f32 %v952_v42, %v406_v12  ;;  %v357_v63 = vld [vmem:[#allocation8 + $0x2b0] sm:$0xff]  ;;  %v358_v4 = vld [vmem:[#allocation8 + $0x2b8] sm:$0xff] }
  0x5f   :  { %v424_v32 = vmul.f32 %v952_v42, %v407_v13  ;;  %v488_v37 = vadd.f32 %v472_v44, %v437_v20  ;;  %v489_v38 = vadd.f32 %v473_v40, %v438_v21  ;;  %v474_v47 = vmul.f32 %v955_v43, %v457_v19  ;;  %v256_v40 = vld [vmem:[#allocation8 + $0x1b8] sm:$0xff]  ;;  %v459_v10 = vld [vmem:[#allocation8 + $0x3b0] sm:$0xff]  ;;  %v105_v19 = vld [vmem:[#allocation8 + $0x48] sm:$0xff] }
  0x60   :  { %v286_v39 = vadd.f32 %v270_v5, %v235_v22  ;;  %v287_v34 = vadd.f32 %v271_v14, %v236_v23  ;;  %v119_v48 = vmul.f32 %v926_v6, %v102_v24  ;;  %v120_v51 = vmul.f32 %v926_v6, %v103_v25  ;;  %v408_v5 = vld [vmem:[#allocation8 + $0x330] sm:$0xff]  ;;  %v409_v9 = vld [vmem:[#allocation8 + $0x338] sm:$0xff]  ;;  %v155_v24 = vld [vmem:[#allocation8 + $0xc0] sm:$0xff] }
  0x61   :  { %v170_v52 = vmul.f32 %v930_v11, %v153_v26  ;;  %v685_v56 = vpack.c.bf16 %v489_v38, %v488_v37  ;;  %v171_v44 = vmul.f32 %v930_v11, %v154_v36  ;;  %v221_v60 = vmul.f32 %v934_v16, %v204_v41  ;;  %v156_v25 = vld [vmem:[#allocation8 + $0xc8] sm:$0xff]  ;;  %v206_v26 = vld [vmem:[#allocation8 + $0x140] sm:$0xff] }
  0x62   :  { %v337_v57 = vadd.f32 %v321_v15, %v286_v39  ;;  %v338_v58 = vadd.f32 %v322_v18, %v287_v34  ;;  %v135_v50 = vadd.f32 %v119_v48, %v85_v33  ;;  %v136_v59 = vadd.f32 %v120_v51, %v86_v35  ;;  %v104_v18 = vld [vmem:[#allocation8 + $0x40] sm:$0xff]  ;;  %v88_v37 = vld [vmem:[#allocation10 + $0x48] sm:$0xff] }
  0x63   :  { %v222_v61 = vmul.f32 %v934_v16, %v205_v45  ;;  %686 = vmatprep.subr.bf16.mxu0 %v685_v56  ;;  %v475_v2 = vmul.f32 %v955_v43, %v458_v46  ;;  %v272_v3 = vmul.f32 %v936_v17, %v255_v53  ;;  %v273_v7 = vmul.f32 %v936_v17, %v256_v40  ;;  %v87_v36 = vld [vmem:[#allocation10 + $0x40] sm:$0xff]  ;;  %v207_v41 = vld [vmem:[#allocation8 + $0x148] sm:$0xff] }
  0x64   :  { %v388_v0 = vadd.f32 %v372_v27, %v337_v57  ;;  %v389_v1 = vadd.f32 %v373_v30, %v338_v58  ;;  %v186_v54 = vadd.f32 %v170_v52, %v135_v50  ;;  %v187_v55 = vadd.f32 %v171_v44, %v136_v59  ;;  %v257_v45 = vld [vmem:[#allocation8 + $0x1c0] sm:$0xff]  ;;  %v258_v46 = vld [vmem:[#allocation8 + $0x1c8] sm:$0xff] }
  0x65   :  { %v323_v8 = vmul.f32 %v943_v28, %v306_v49  ;;  %v324_v14 = vmul.f32 %v943_v28, %v307_v62  ;;  %v374_v15 = vmul.f32 %v945_v29, %v357_v63  ;;  %v375_v22 = vmul.f32 %v945_v29, %v358_v4  ;;  %v308_v53 = vld [vmem:[#allocation8 + $0x240] sm:$0xff]  ;;  %v309_v40 = vld [vmem:[#allocation8 + $0x248] sm:$0xff] }
  0x66   :  { %688 = vmatpush3.bf16.xpose.msra.mxu0 %v685_v56  ;;  %v439_v12 = vadd.f32 %v423_v31, %v388_v0  ;;  %v440_v13 = vadd.f32 %v424_v32, %v389_v1  ;;  %v237_v20 = vadd.f32 %v221_v60, %v186_v54  ;;  %v238_v21 = vadd.f32 %v222_v61, %v187_v55  ;;  %v460_v32 = vld [vmem:[#allocation8 + $0x3b8] sm:$0xff]  ;;  %v359_v49 = vld [vmem:[#allocation8 + $0x2c0] sm:$0xff]  ;;  %v360_v50 = vld [vmem:[#allocation8 + $0x2c8] sm:$0xff] }
  0x67   :  { %v425_v23 = vmul.f32 %v952_v42, %v408_v5  ;;  %v426_v31 = vmul.f32 %v952_v42, %v409_v9  ;;  %v476_v33 = vmul.f32 %v955_v43, %v459_v10  ;;  %v121_v34 = vmul.f32 %v926_v6, %v104_v18  ;;  %v410_v63 = vld [vmem:[#allocation8 + $0x340] sm:$0xff]  ;;  %v411_v4 = vld [vmem:[#allocation8 + $0x348] sm:$0xff]  ;;  %v106_v54 = vld [vmem:[#allocation8 + $0x50] sm:$0xff] }
  0x68   :  { %v490_v27 = vadd.f32 %v474_v47, %v439_v12  ;;  %v491_v30 = vadd.f32 %v475_v2, %v440_v13  ;;  %v288_v38 = vadd.f32 %v272_v3, %v237_v20  ;;  %v289_v39 = vadd.f32 %v273_v7, %v238_v21  ;;  %v461_v5 = vld [vmem:[#allocation8 + $0x3c0] sm:$0xff]  ;;  %v89_v10 = vld [vmem:[#allocation10 + $0x50] sm:$0xff]  ;;  %v107_v18 = vld [vmem:[#allocation8 + $0x58] sm:$0xff] }
  0x69   :  { %v122_v35 = vmul.f32 %v926_v6, %v105_v19  ;;  %v172_v47 = vmul.f32 %v930_v11, %v155_v24  ;;  %v173_v51 = vmul.f32 %v930_v11, %v156_v25  ;;  %v223_v52 = vmul.f32 %v934_v16, %v206_v26  ;;  %v157_v19 = vld [vmem:[#allocation8 + $0xd0] sm:$0xff]  ;;  %v158_v20 = vld [vmem:[#allocation8 + $0xd8] sm:$0xff] }
  0x6a   :  { %v689_v48 = vpack.c.bf16 %v491_v30, %v490_v27  ;;  %v339_v56 = vadd.f32 %v323_v8, %v288_v38  ;;  %v340_v57 = vadd.f32 %v324_v14, %v289_v39  ;;  %v137_v58 = vadd.f32 %v121_v34, %v87_v36  ;;  %v208_v26 = vld [vmem:[#allocation8 + $0x150] sm:$0xff]  ;;  %v462_v38 = vld [vmem:[#allocation8 + $0x3c8] sm:$0xff] }
  0x6b   :  { %v138_v44 = vadd.f32 %v122_v35, %v88_v37  ;;  %v477_v59 = vmul.f32 %v955_v43, %v460_v32  ;;  %v224_v60 = vmul.f32 %v934_v16, %v207_v41  ;;  %v274_v61 = vmul.f32 %v936_v17, %v257_v45  ;;  %v259_v37 = vld [vmem:[#allocation8 + $0x1d0] sm:$0xff]  ;;  %v260_v45 = vld [vmem:[#allocation8 + $0x1d8] sm:$0xff] }
  0x6c   :  { %690 = vmatprep.subr.bf16.mxu0 %v689_v48  ;;  %v275_v62 = vmul.f32 %v936_v17, %v258_v46  ;;  %v390_v0 = vadd.f32 %v374_v15, %v339_v56  ;;  %v391_v1 = vadd.f32 %v375_v22, %v340_v57  ;;  %v188_v2 = vadd.f32 %v172_v47, %v137_v58  ;;  %v504_v46 = vld [vmem:[#allocation7] sm:$0xff] }
  0x6d   :  { %v189_v3 = vadd.f32 %v173_v51, %v138_v44  ;;  %v325_v55 = vmul.f32 %v943_v28, %v308_v53  ;;  %v326_v7 = vmul.f32 %v943_v28, %v309_v40  ;;  %v376_v8 = vmul.f32 %v945_v29, %v359_v49  ;;  %v311_v53 = vld [vmem:[#allocation8 + $0x258] sm:$0xff]  ;;  %678 = vmatprep.mubr.f32.mxu0 %v504_v46  ;;  %v361_v40 = vld [vmem:[#allocation8 + $0x2d0] sm:$0xff] }
  0x6e   :  { %692 = vmatpush3.bf16.xpose.msra.mxu0 %v689_v48  ;;  %v377_v9 = vmul.f32 %v945_v29, %v360_v50  ;;  %v441_v12 = vadd.f32 %v425_v23, %v390_v0  ;;  %v442_v13 = vadd.f32 %v426_v31, %v391_v1  ;;  %v239_v14 = vadd.f32 %v223_v52, %v188_v2  ;;  %v90_v23 = vld [vmem:[#allocation10 + $0x58] sm:$0xff]  ;;  %v310_v52 = vld [vmem:[#allocation8 + $0x250] sm:$0xff] }
  0x6f   :  { %v240_v15 = vadd.f32 %v224_v60, %v189_v3  ;;  %v427_v21 = vmul.f32 %v952_v42, %v410_v63  ;;  %v428_v22 = vmul.f32 %v952_v42, %v411_v4  ;;  %v478_v24 = vmul.f32 %v955_v43, %v461_v5  ;;  %v209_v31 = vld [vmem:[#allocation8 + $0x158] sm:$0xff]  ;;  %v463_v4 = vld [vmem:[#allocation8 + $0x3d0] sm:$0xff]  ;;  %v108_v5 = vld [vmem:[#allocation8 + $0x60] sm:$0xff] }
  0x70   :  { %v123_v25 = vmul.f32 %v926_v6, %v106_v54  ;;  %v492_v27 = vadd.f32 %v476_v33, %v441_v12  ;;  %v493_v30 = vadd.f32 %v477_v59, %v442_v13  ;;  %v290_v32 = vadd.f32 %v274_v61, %v239_v14  ;;  %v362_v49 = vld [vmem:[#allocation8 + $0x2d8] sm:$0xff] }
  0x71   :  { %v291_v36 = vadd.f32 %v275_v62, %v240_v15  ;;  %v124_v39 = vmul.f32 %v926_v6, %v107_v18  ;;  %v174_v35 = vmul.f32 %v930_v11, %v157_v19  ;;  %v175_v41 = vmul.f32 %v930_v11, %v158_v20  ;;  %v412_v62 = vld [vmem:[#allocation8 + $0x350] sm:$0xff]  ;;  %v413_v63 = vld [vmem:[#allocation8 + $0x358] sm:$0xff]  ;;  %v91_v18 = vld [vmem:[#allocation10 + $0x60] sm:$0xff] }
  0x72   :  { %v139_v34 = vadd.f32 %v123_v25, %v89_v10  ;;  %v693_v48 = vpack.c.bf16 %v493_v30, %v492_v27  ;;  %v341_v47 = vadd.f32 %v325_v55, %v290_v32  ;;  %v225_v33 = vmul.f32 %v934_v16, %v208_v26  ;;  %v159_v10 = vld [vmem:[#allocation8 + $0xe0] sm:$0xff]  ;;  %v160_v19 = vld [vmem:[#allocation8 + $0xe8] sm:$0xff] }
  0x73   :  { %v342_v51 = vadd.f32 %v326_v7, %v291_v36  ;;  %v140_v56 = vadd.f32 %v124_v39, %v90_v23  ;;  %v226_v58 = vmul.f32 %v934_v16, %v209_v31  ;;  %v276_v44 = vmul.f32 %v936_v17, %v259_v37  ;;  %v210_v20 = vld [vmem:[#allocation8 + $0x160] sm:$0xff]  ;;  %v211_v30 = vld [vmem:[#allocation8 + $0x168] sm:$0xff]  ;;  %v464_v23 = vld [vmem:[#allocation8 + $0x3d8] sm:$0xff] }
  0x74   :  { %v190_v57 = vadd.f32 %v174_v35, %v139_v34  ;;  %694 = vmatprep.subr.bf16.mxu0 %v693_v48  ;;  %v392_v50 = vadd.f32 %v376_v8, %v341_v47  ;;  %v479_v60 = vmul.f32 %v955_v43, %v462_v38  ;;  %v277_v61 = vmul.f32 %v936_v17, %v260_v45  ;;  %v261_v38 = vld [vmem:[#allocation8 + $0x1e0] sm:$0xff] }
  0x75   :  { %v393_v59 = vadd.f32 %v377_v9, %v342_v51  ;;  %v191_v0 = vadd.f32 %v175_v41, %v140_v56  ;;  %v327_v2 = vmul.f32 %v943_v28, %v310_v52  ;;  %v328_v3 = vmul.f32 %v943_v28, %v311_v53  ;;  %v109_v9 = vld [vmem:[#allocation8 + $0x68] sm:$0xff]  ;;  %v312_v51 = vld [vmem:[#allocation8 + $0x260] sm:$0xff] }
  0x76   :  { %696 = vmatpush3.bf16.xpose.msra.mxu0 %v693_v48  ;;  %v241_v1 = vadd.f32 %v225_v33, %v190_v57  ;;  %v443_v54 = vadd.f32 %v427_v21, %v392_v50  ;;  %v378_v7 = vmul.f32 %v945_v29, %v361_v40  ;;  %v379_v8 = vmul.f32 %v945_v29, %v362_v49  ;;  %v262_v41 = vld [vmem:[#allocation8 + $0x1e8] sm:$0xff]  ;;  %v363_v52 = vld [vmem:[#allocation8 + $0x2e0] sm:$0xff] }
  0x77   :  { %v444_v55 = vadd.f32 %v428_v22, %v393_v59  ;;  %v242_v12 = vadd.f32 %v226_v58, %v191_v0  ;;  %v429_v14 = vmul.f32 %v952_v42, %v412_v62  ;;  %v430_v15 = vmul.f32 %v952_v42, %v413_v63  ;;  %v92_v22 = vld [vmem:[#allocation10 + $0x68] sm:$0xff]  ;;  %v414_v59 = vld [vmem:[#allocation8 + $0x360] sm:$0xff] }
  0x78   :  { %v292_v13 = vadd.f32 %v276_v44, %v241_v1  ;;  %v494_v25 = vadd.f32 %v478_v24, %v443_v54  ;;  %v480_v21 = vmul.f32 %v955_v43, %v463_v4  ;;  %v125_v27 = vmul.f32 %v926_v6, %v108_v5  ;;  %v313_v33 = vld [vmem:[#allocation8 + $0x268] sm:$0xff] }
  0x79   :  { %v495_v26 = vadd.f32 %v479_v60, %v444_v55  ;;  %v293_v32 = vadd.f32 %v277_v61, %v242_v12  ;;  %v126_v31 = vmul.f32 %v926_v6, %v109_v9  ;;  %v176_v37 = vmul.f32 %v930_v11, %v159_v10  ;;  %v364_v58 = vld [vmem:[#allocation8 + $0x2e8] sm:$0xff]  ;;  %v110_v61 = vld [vmem:[#allocation8 + $0x70] sm:$0xff] }
  0x7a   :  { %v343_v36 = vadd.f32 %v327_v2, %v292_v13  ;;  %v141_v34 = vadd.f32 %v125_v27, %v91_v18  ;;  %v177_v35 = vmul.f32 %v930_v11, %v160_v19  ;;  %v227_v24 = vmul.f32 %v934_v16, %v210_v20  ;;  %v415_v60 = vld [vmem:[#allocation8 + $0x368] sm:$0xff]  ;;  %v111_v2 = vld [vmem:[#allocation8 + $0x78] sm:$0xff]  ;;  %v212_v9 = vld [vmem:[#allocation8 + $0x170] sm:$0xff] }
  0x7b   :  { %v697_v39 = vpack.c.bf16 %v495_v26, %v494_v25  ;;  %v344_v45 = vadd.f32 %v328_v3, %v293_v32  ;;  %v142_v48 = vadd.f32 %v126_v31, %v92_v22  ;;  %v228_v47 = vmul.f32 %v934_v16, %v211_v30  ;;  %v161_v3 = vld [vmem:[#allocation8 + $0xf0] sm:$0xff]  ;;  %v213_v19 = vld [vmem:[#allocation8 + $0x178] sm:$0xff]  ;;  %v465_v26 = vld [vmem:[#allocation8 + $0x3e0] sm:$0xff] }
  0x7c   :  { %v394_v46 = vadd.f32 %v378_v7, %v343_v36  ;;  %v481_v53 = vmul.f32 %v955_v43, %v464_v23  ;;  %v192_v56 = vadd.f32 %v176_v37, %v141_v34  ;;  %v278_v57 = vmul.f32 %v936_v17, %v261_v38  ;;  %v93_v7 = vld [vmem:[#allocation10 + $0x70] sm:$0xff]  ;;  %v466_v30 = vld [vmem:[#allocation8 + $0x3e8] sm:$0xff]  ;;  %v264_v31 = vld [vmem:[#allocation8 + $0x1f8] sm:$0xff] }
  0x7d   :  { %698 = vmatprep.subr.bf16.mxu0 %v697_v39  ;;  %v395_v44 = vadd.f32 %v379_v8, %v344_v45  ;;  %v193_v49 = vadd.f32 %v177_v35, %v142_v48  ;;  %v279_v50 = vmul.f32 %v936_v17, %v262_v41  ;;  %v329_v63 = vmul.f32 %v943_v28, %v312_v51  ;;  %v162_v8 = vld [vmem:[#allocation8 + $0xf8] sm:$0xff]  ;;  %v263_v22 = vld [vmem:[#allocation8 + $0x1f0] sm:$0xff] }
  0x7e   :  { %700 = vmatpush3.bf16.xpose.msra.mxu0 %v697_v39  ;;  %v445_v40 = vadd.f32 %v429_v14, %v394_v46  ;;  %v243_v62 = vadd.f32 %v227_v24, %v192_v56  ;;  %v330_v0 = vmul.f32 %v943_v28, %v313_v33  ;;  %v380_v1 = vmul.f32 %v945_v29, %v363_v52  ;;  %v94_v14 = vld [vmem:[#allocation10 + $0x78] sm:$0xff]  ;;  %v314_v35 = vld [vmem:[#allocation8 + $0x270] sm:$0xff] }
  0x7f   :  { %v446_v4 = vadd.f32 %v430_v15, %v395_v44  ;;  %v244_v54 = vadd.f32 %v228_v47, %v193_v49  ;;  %v381_v55 = vmul.f32 %v945_v29, %v364_v58  ;;  %v431_v12 = vmul.f32 %v952_v42, %v414_v59  ;;  %v315_v46 = vld [vmem:[#allocation8 + $0x278] sm:$0xff]  ;;  %v365_v33 = vld [vmem:[#allocation8 + $0x2f0] sm:$0xff] }
  0x80   :  { %v496_v5 = vadd.f32 %v480_v21, %v445_v40  ;;  %v294_v10 = vadd.f32 %v278_v57, %v243_v62  ;;  %v432_v13 = vmul.f32 %v952_v42, %v415_v60  ;;  %v127_v18 = vmul.f32 %v926_v6, %v110_v61  ;;  %v366_v56 = vld [vmem:[#allocation8 + $0x2f8] sm:$0xff]  ;;  %v416_v40 = vld [vmem:[#allocation8 + $0x370] sm:$0xff] }
  0x81   :  { %v497_v20 = vadd.f32 %v481_v53, %v446_v4  ;;  %v295_v25 = vadd.f32 %v279_v50, %v244_v54  ;;  %v128_v15 = vmul.f32 %v926_v6, %v111_v2  ;;  %v178_v21 = vmul.f32 %v930_v11, %v161_v3  ;;  %v417_v60 = vld [vmem:[#allocation8 + $0x378] sm:$0xff] }
  0x82   :  { %v345_v27 = vadd.f32 %v329_v63, %v294_v10  ;;  %v143_v32 = vadd.f32 %v127_v18, %v93_v7  ;;  %v179_v36 = vmul.f32 %v930_v11, %v162_v8  ;;  %v229_v23 = vmul.f32 %v934_v16, %v212_v9  ;;  %v467_v63 = vld [vmem:[#allocation8 + $0x3f0] sm:$0xff]  ;;  %v468_v2 = vld [vmem:[#allocation8 + $0x3f8] sm:$0xff] }
  0x83   :  { %v701_v37 = vpack.c.bf16 %v497_v20, %v496_v5  ;;  %v346_v38 = vadd.f32 %v330_v0, %v295_v25  ;;  %v144_v39 = vadd.f32 %v128_v15, %v94_v14  ;;  %v230_v34 = vmul.f32 %v934_v16, %v213_v19 }
  0x84   :  { %v396_v24 = vadd.f32 %v380_v1, %v345_v27  ;;  %v482_v6 = vmul.f32 %v955_v43, %v465_v26  ;;  %v194_v41 = vadd.f32 %v178_v21, %v143_v32  ;;  %v280_v45 = vmul.f32 %v936_v17, %v263_v22 }
  0x85   :  { %702 = vmatprep.subr.bf16.mxu0 %v701_v37  ;;  %v397_v48 = vadd.f32 %v381_v55, %v346_v38  ;;  %v483_v11 = vmul.f32 %v955_v43, %v466_v30  ;;  %v195_v47 = vadd.f32 %v179_v36, %v144_v39  ;;  %v281_v51 = vmul.f32 %v936_v17, %v264_v31 }
  0x86   :  { %704 = vmatpush3.bf16.xpose.msra.mxu0 %v701_v37  ;;  %v447_v52 = vadd.f32 %v431_v12, %v396_v24  ;;  %v245_v53 = vadd.f32 %v229_v23, %v194_v41  ;;  %v331_v16 = vmul.f32 %v943_v28, %v314_v35  ;;  %v332_v44 = vmul.f32 %v943_v28, %v315_v46 }
  0x87   :  { %v448_v57 = vadd.f32 %v432_v13, %v397_v48  ;;  %v246_v58 = vadd.f32 %v230_v34, %v195_v47  ;;  %v382_v59 = vmul.f32 %v945_v29, %v365_v33  ;;  %v383_v17 = vmul.f32 %v945_v29, %v366_v56  ;;  %v505_v13 = vld [vmem:[#allocation7 + $0x8] sm:$0xff] }
  0x88   :  { %v498_v49 = vadd.f32 %v482_v6, %v447_v52  ;;  %v296_v50 = vadd.f32 %v280_v45, %v245_v53  ;;  %v433_v1 = vmul.f32 %v952_v42, %v416_v40  ;;  %v434_v5 = vmul.f32 %v952_v42, %v417_v60  ;;  %v627_v42 = vld [vmem:[%s1095_s4] ss:$0 sm:$0xff] }
  0x89   :  { %v499_v61 = vadd.f32 %v483_v11, %v448_v57  ;;  %v297_v62 = vadd.f32 %v281_v51, %v246_v58  ;;  %v484_v54 = vmul.f32 %v955_v43, %v467_v63  ;;  %v485_v7 = vmul.f32 %v955_v43, %v468_v2 }
  0x8a   :  { %v347_v0 = vadd.f32 %v331_v16, %v296_v50 }
  0x8b   :  { %v705_v3 = vpack.c.bf16 %v499_v61, %v498_v49  ;;  %v348_v4 = vadd.f32 %v332_v44, %v297_v62 }
  0x8c   :  { %v398_v28 = vadd.f32 %v382_v59, %v347_v0 }
  0x8d   :  { %706 = vmatprep.subr.bf16.mxu0 %v705_v3  ;;  %v399_v55 = vadd.f32 %v383_v17, %v348_v4 }
  0x8e   :  { %708 = vmatpush3.bf16.xpose.msra.mxu0 %v705_v3  ;;  %v449_v8 = vadd.f32 %v433_v1, %v398_v28 }
  0x8f   :  { %v450_v9 = vadd.f32 %v434_v5, %v399_v55 }
  0x90   :  { %v500_v29 = vadd.f32 %v484_v54, %v449_v8 }
  0x91   :  { %v501_v10 = vadd.f32 %v485_v7, %v450_v9 }
  0x93   :  { %v709_v12 = vpack.c.bf16 %v501_v10, %v500_v29 }
  0x95   :  { %710 = vmatprep.subr.bf16.mxu0 %v709_v12 }
  0x96   :  { %712 = vmatpush3.bf16.xpose.msra.mxu0 %v709_v12 }
  0x9d   :  { %679 = vmatmul.mubr.f32.vlgmr.msra.gmra.mrb[0].mxu0 %v505_v13 }
 0x170   :  { %v680_v14 = vpop.f32.mrb[0].mxu0 }
 0x171   :  { %v598_v18 = vadd.f32 %v680_v14, %v627_v42  ;;  %v572_v19 = vpop.f32.mrb[1].mxu0 }
 0x172   :  { %v597_v43 = vadd.f32 %v627_v42, %v572_v19 }
 0x173   :  { %600 = vst [vmem:[#allocation11 + $0x8] sm:$0xff] %v598_v18 }
 0x174   :  { %599 = vst [vmem:[#allocation11] sm:$0xff] %v597_v43 }
 0x175   :  { %807 = shalt.err (!%p804_p3)
}
 0x176   :  { %s808_s4 = scalar_lea.hbm %s1096_s5, 256 }
 0x177   :  { %p809_p4 = scmp.ne.s32.totalorder %s1096_s5, %s808_s4  ;;  %p812_p5 = scmp.lt.u32.totalorder %s808_s4, %s1096_s5 }
 0x179   :  { %p814_p6 = pnand %p812_p5, %p809_p4 }
 0x17b   :  { %817 = shalt.err (!%p814_p6)
}
 0x17c   :  { %612 = dma.vmem_to_hbm [thread:$0]  %s607_s25, 256, %s1096_s5, [#allocation5], %s828_s30, %s828_s30, %s829_s6  }
 0x17d   :  { %824 = dma.done.wait [#allocation5], 256  }
 0x17e   :  { %825 = vsyncadd [#allocation5], 4294967040 }
 0x17f   :  { %616 = vsyncpa [#allocation4], 1 }
 0x180   :  { %617 = vsyncpa [#allocation9], 1 }
 0x181   :  { %618 = vsyncpa [#allocation5], 1 }
 0x182   :  { %619 = vsyncpa [#allocation6], 1 }

</bundles_post_ra>
